<compile_context>
chip_gen: v5e
topology: v5e:2x2
jax: 0.10.0
libtpu: 0.0.40
codegen_flags: <defaults>
</compile_context>

<pallas_src>
import math
import functools

import numpy as np
import jax
import jax.numpy as jnp
from jax.experimental import pallas as pl
from jax.experimental.pallas import tpu as pltpu


# ------------------------------- helpers -------------------------------------

def _round_up(x, m):
    return ((x + m - 1) // m) * m


def _pick_tb(B, Sq, Sk, max_tb=8):
    """Largest batch block that keeps sublane blocks 8-aligned and (when
    B >= 2) leaves at least 2 grid steps for megacore sharding."""
    cands = []
    for t in range(1, B + 1):
        if B % t:
            continue
        ok_align = ((t * Sq) % 8 == 0 and (t * Sk) % 8 == 0) or t == B
        if not ok_align:
            continue
        cands.append(t)
    pref = [t for t in cands if (B < 2 or B // t >= 2) and t <= max_tb]
    pool = pref if pref else cands
    return max(pool) if pool else B


def _vmem_limit_bytes():
    """Per-generation VMEM budget (v7x has 64 MiB/TC, v5e/v6e 128 MiB)."""
    cap = None
    try:
        info = pltpu.get_tpu_info()
        cap = getattr(info, "vmem_capacity_bytes", None)
    except Exception:
        cap = None
    if not cap:
        cap = 64 * 1024 * 1024          # conservative (v7x per-TC)
    return int(min(max(cap * 2 // 3, 32 * 1024 * 1024), 112 * 1024 * 1024))


# ----------------------------- Pallas kernel ----------------------------------

def _mha_fused_kernel(*refs, heads, d_kp, tb, sq, sk, self_attn, compute_dtype):
    """One batch block per grid step: QKV projections -> attention -> out proj."""
    if self_attn:
        (x_ref, wq_ref, wk_ref, wv_ref, wo_ref,
         bq_ref, bk_ref, bv_ref, bo_ref, o_ref, hcat_ref) = refs
    else:
        (xq_ref, xk_ref, xv_ref, wq_ref, wk_ref, wv_ref, wo_ref,
         bq_ref, bk_ref, bv_ref, bo_ref, o_ref, hcat_ref) = refs

    f32 = jnp.float32
    cdt = compute_dtype

    # Cast to compute dtype IN-KERNEL (free VPU op; avoids an XLA HBM pass).
    if self_attn:
        x = x_ref[...].astype(cdt)                       # (tb*sq, Din)
        xq = xk = xv = x
    else:
        xq = xq_ref[...].astype(cdt)                     # (tb*sq, Din)
        xk = xk_ref[...].astype(cdt)                     # (tb*sk, Din)
        xv = xv_ref[...].astype(cdt)

    # Tall-M projections over the whole batch block; f32 MXU accumulation and
    # f32 bias add (1/sqrt(d_k) is already folded into Wq/bq), one cast after.
    qp = (jnp.dot(xq, wq_ref[...], preferred_element_type=f32) + bq_ref[...]).astype(cdt)
    kp = (jnp.dot(xk, wk_ref[...], preferred_element_type=f32) + bk_ref[...]).astype(cdt)
    vp = (jnp.dot(xv, wv_ref[...], preferred_element_type=f32) + bv_ref[...]).astype(cdt)

    # Per-(batch-in-block, head) attention.
    # TODO(synk): replace with a KV-tiled online-softmax (flash) loop once
    # S^2*4B approaches the VMEM budget (v7x 64 MiB/TC breaks first).
    for b in range(tb):
        qrows = slice(b * sq, (b + 1) * sq)
        krows = slice(b * sk, (b + 1) * sk)
        for h in range(heads):
            cols = slice(h * d_kp, (h + 1) * d_kp)
            qh = qp[qrows, cols]                         # (sq, d_kp)
            kh = kp[krows, cols]                         # (sk, d_kp)
            vh = vp[krows, cols]                         # (sk, d_kp)

            # scores (scale folded into Wq/bq); softmax stats stay f32.
            s = jax.lax.dot_general(qh, kh, (((1,), (1,)), ((), ())),
                                    preferred_element_type=f32)      # (sq, sk)
            m = jnp.max(s, axis=-1, keepdims=True)
            e = jnp.exp(s - m)
            l = jnp.sum(e, axis=-1, keepdims=True)
            r = pl.reciprocal(l, approx=True)
            r = r * (2.0 - l * r)                        # one Newton step -> ~f32 accuracy

            # Deferred normalization: MXU on un-normalized e, then a small
            # O(sq*d_kp) f32 scale instead of an O(sq*sk) VPU multiply.
            oh = jnp.dot(e.astype(cdt), vh, preferred_element_type=f32) * r
            hcat_ref[qrows, cols] = oh.astype(cdt)       # lane-aligned slice write

    # Single wide output projection for the whole block (K = heads*d_kp),
    # lane-dense (tb*sq, Dp) store.
    out = jnp.dot(hcat_ref[...], wo_ref[...], preferred_element_type=f32) + bo_ref[...]
    o_ref[...] = out.astype(o_ref.dtype)


# ------------------------------- wrapper --------------------------------------

def mha_forward(q, k, v, wq_t, wk_t, wv_t, wo_t, bq, bk, bv, bo, *,
                heads, d_kp, d_model, compute_dtype=jnp.float32, max_tb=8):
    """q,k,v: (B, Sq/Sk, D) -> (B, Sq, D). Single fused pallas_call."""
    B, Sq, Din = q.shape
    Sk = k.shape[1]
    self_attn = (q is k) and (k is v)
    tb = _pick_tb(B, Sq, Sk, max_tb)
    grid = (B // tb,)

    Dh = heads * d_kp                     # padded concat width
    Dp = wo_t.shape[1]                    # padded output width (multiple of 128)
    out_dtype = q.dtype

    # Flatten (B, S, D) -> (B*S, D): contiguous, metadata-only in XLA; lets the
    # kernel see a 2-D tile directly (no in-kernel reshape).
    acts = [q.reshape(B * Sq, Din)]
    act_specs = [pl.BlockSpec((tb * Sq, Din), lambda i: (i, 0))]
    if not self_attn:
        acts += [k.reshape(B * Sk, Din), v.reshape(B * Sk, Din)]
        act_specs += [pl.BlockSpec((tb * Sk, Din), lambda i: (i, 0)),
                      pl.BlockSpec((tb * Sk, Din), lambda i: (i, 0))]

    def full(shape):                      # weight/bias resident across the grid
        return pl.BlockSpec(shape, lambda i: (0,) * len(shape))

    kern = functools.partial(
        _mha_fused_kernel, heads=heads, d_kp=d_kp, tb=tb, sq=Sq, sk=Sk,
        self_attn=self_attn, compute_dtype=compute_dtype)

    out = pl.pallas_call(
        kern,
        out_shape=jax.ShapeDtypeStruct((B * Sq, Dp), out_dtype),
        grid=grid,
        in_specs=act_specs + [
            full(wq_t.shape), full(wk_t.shape), full(wv_t.shape), full(wo_t.shape),
            full(bq.shape), full(bk.shape), full(bv.shape), full(bo.shape),
        ],
        out_specs=pl.BlockSpec((tb * Sq, Dp), lambda i: (i, 0)),
        scratch_shapes=[pltpu.VMEM((tb * Sq, Dh), compute_dtype)],
        compiler_params=pltpu.CompilerParams(
            dimension_semantics=("parallel",),
            vmem_limit_bytes=_vmem_limit_bytes()),
    )(*acts, wq_t, wk_t, wv_t, wo_t, bq, bk, bv, bo)

    if Dp != d_model:                     # un-pad once in the wrapper
        out = out[:, :d_model]
    return out.reshape(B, Sq, d_model)


# ------------------------------- modules --------------------------------------

class MultiHeadAttentionPallas:
    """Deterministic-parameter re-implementation of the PyTorch module."""

    def __init__(self, heads, d_model, key, compute_dtype=jnp.float32):
        assert d_model % heads == 0
        self.d_model = d_model
        self.h = heads
        self.d_k = d_model // heads
        self.compute_dtype = compute_dtype

        keys = jax.random.split(key, 8)
        s = 1.0 / math.sqrt(d_model)
        mk = lambda kk, shape: jax.random.uniform(kk, shape, jnp.float32, -s, s)

        # PyTorch-layout originals (Dout, Din) kept for the pure-JAX reference.
        self.q_w = mk(keys[0], (d_model, d_model)); self.q_b = mk(keys[1], (d_model,))
        self.k_w = mk(keys[2], (d_model, d_model)); self.k_b = mk(keys[3], (d_model,))
        self.v_w = mk(keys[4], (d_model, d_model)); self.v_b = mk(keys[5], (d_model,))
        self.o_w = mk(keys[6], (d_model, d_model)); self.o_b = mk(keys[7], (d_model,))

        # --- kernel-side parameters, prepared ONCE at init ---
        lane = 128
        self.d_kp = _round_up(self.d_k, lane)      # per-head padded width
        self.dh = heads * self.d_kp                # padded concat width
        self.dp = _round_up(d_model, lane)         # padded model (output) width
        scale = 1.0 / math.sqrt(self.d_k)          # folded into Wq / bq

        def head_pad_cols(w_t, bias, scl):
            # w_t: (Din, d_model) transposed Linear weight.  Output features are
            # re-laid-out into head-blocked, 128-lane-padded column blocks.
            wp = jnp.zeros((d_model, self.dh), jnp.float32)
            bp = jnp.zeros((1, self.dh), jnp.float32)
            for hh in range(heads):
                src = slice(hh * self.d_k, (hh + 1) * self.d_k)
                dst = slice(hh * self.d_kp, hh * self.d_kp + self.d_k)
                wp = wp.at[:, dst].set(w_t[:, src] * scl)
                bp = bp.at[0, dst].set(bias[src] * scl)
            return wp, bp

        wq_p, bq_p = head_pad_cols(self.q_w.T, self.q_b, scale)
        wk_p, bk_p = head_pad_cols(self.k_w.T, self.k_b, 1.0)
        wv_p, bv_p = head_pad_cols(self.v_w.T, self.v_b, 1.0)

        # Output projection: re-lay-out INPUT features to the head-blocked padded
        # layout and pad output features to dp lanes (lane-dense final store).
        wo_t = self.o_w.T                                   # (d_model, d_model)
        wo_p = jnp.zeros((self.dh, self.dp), jnp.float32)
        for hh in range(heads):
            src = slice(hh * self.d_k, (hh + 1) * self.d_k)
            dst = slice(hh * self.d_kp, hh * self.d_kp + self.d_k)
            wo_p = wo_p.at[dst, :d_model].set(wo_t[src, :])
        bo_p = jnp.zeros((1, self.dp), jnp.float32).at[0, :d_model].set(self.o_b)

        cdt = compute_dtype
        self.wq_t = wq_p.astype(cdt); self.wk_t = wk_p.astype(cdt)
        self.wv_t = wv_p.astype(cdt); self.wo_t = wo_p.astype(cdt)
        self.bq2 = bq_p; self.bk2 = bk_p; self.bv2 = bv_p; self.bo2 = bo_p  # f32 biases
        # dropout=0.0 in the reference default -> no-op.

    def __call__(self, q, k, v, mask=None):
        # NOTE: the original PyTorch attention() accepts `mask` and never uses
        # it, so ignoring it here exactly matches the reference semantics.
        # TODO(synk): add masked scores if SAMRnet ever passes a real mask.
        del mask
        return mha_forward(q, k, v,
                           self.wq_t, self.wk_t, self.wv_t, self.wo_t,
                           self.bq2, self.bk2, self.bv2, self.bo2,
                           heads=self.h, d_kp=self.d_kp, d_model=self.d_model,
                           compute_dtype=self.compute_dtype)


def positional_encoding_2d(d_model, height, width, dtype=jnp.float32):
    """Port of the reference positional_encoding_2d (host-side, computed once)."""
    if d_model % 4 != 0:
        raise ValueError("Cannot use sin/cos positional encoding with odd dim "
                         "(got dim={:d})".format(d_model))
    pe = np.zeros((d_model, height, width), np.float32)
    dm = d_model // 2
    div_term = np.exp(np.arange(0.0, dm, 2) * -(math.log(10000.0) / dm))
    pos_w = np.arange(0.0, width)[:, None]
    pos_h = np.arange(0.0, height)[:, None]
    pe[0:dm:2, :, :] = np.repeat(np.sin(pos_w * div_term).T[:, None, :], height, axis=1)
    pe[1:dm:2, :, :] = np.repeat(np.cos(pos_w * div_term).T[:, None, :], height, axis=1)
    pe[dm::2, :, :] = np.repeat(np.sin(pos_h * div_term).T[:, :, None], width, axis=2)
    pe[dm + 1::2, :, :] = np.repeat(np.cos(pos_h * div_term).T[:, :, None], width, axis=2)
    return jnp.asarray(pe, dtype)


class MHSABlockPallas:
    """SAMRnet's MHSABlock: 2-D pos-enc + (b,c,h,w)->(b,hw,c) + self-attention."""

    def __init__(self, heads, d_model, key, pos_enc=True, compute_dtype=jnp.float32):
        self.attention = MultiHeadAttentionPallas(heads, d_model, key, compute_dtype)
        self.pos_enc = pos_enc

    def __call__(self, x):
        b, c, h, w = x.shape
        x2 = x
        if self.pos_enc:
            x2 = x2 + positional_encoding_2d(c, h, w, x.dtype)[None]
        x2 = x2.reshape(b, c, h * w).transpose(0, 2, 1)      # (b, hw, c)
        att = self.attention(x2, x2, x2)                     # self-attn fast path
        return att.transpose(0, 2, 1).reshape(b, c, h, w)


# ------------------------------ references ------------------------------------

def _mha_reference(m, q, k, v):
    def lin(x, w, b):
        return x @ w.T + b
    bs, sq, _ = q.shape
    sk = k.shape[1]
    h, dk, dm = m.h, m.d_k, m.d_model
    qp = lin(q, m.q_w, m.q_b).reshape(bs, sq, h, dk).transpose(0, 2, 1, 3)
    kp = lin(k, m.k_w, m.k_b).reshape(bs, sk, h, dk).transpose(0, 2, 1, 3)
    vp = lin(v, m.v_w, m.v_b).reshape(bs, sk, h, dk).transpose(0, 2, 1, 3)
    scores = jnp.einsum('bhqd,bhkd->bhqk', qp, kp) / math.sqrt(dk)
    p = jax.nn.softmax(scores, axis=-1)
    out = jnp.einsum('bhqk,bhkd->bhqd', p, vp)
    concat = out.transpose(0, 2, 1, 3).reshape(bs, sq, dm)
    return lin(concat, m.o_w, m.o_b)


def _mhsa_block_reference(block, x):
    b, c, h, w = x.shape
    x2 = x
    if block.pos_enc:
        x2 = x2 + positional_encoding_2d(c, h, w, x.dtype)[None]
    x2 = x2.reshape(b, c, h * w).transpose(0, 2, 1)
    att = _mha_reference(block.attention, x2, x2, x2)
    return att.transpose(0, 2, 1).reshape(b, c, h, w)


# --------------------------------- main ----------------------------------------

if __name__ == "__main__":
    key = jax.random.PRNGKey(0)

    # Config 1: generic multi-head cross-attention path.
    kp_, kq, kk, kv = jax.random.split(key, 4)
    batch, seq, d_model, heads = 2, 8, 32, 4
    mha = MultiHeadAttentionPallas(heads, d_model, kp_)
    q = jax.random.normal(kq, (batch, seq, d_model), jnp.float32)
    k = jax.random.normal(kk, (batch, seq, d_model), jnp.float32)
    v = jax.random.normal(kv, (batch, seq, d_model), jnp.float32)
    out = jax.block_until_ready(mha(q, k, v))
    ref = _mha_reference(mha, q, k, v)
    assert out.shape == (batch, seq, d_model)
    assert jnp.allclose(out, ref, atol=1e-3, rtol=1e-3), "mismatch vs reference (cfg1)"

    # Config 2: heads=1 self-attention (single-input fast path), like SAMRnet.
    key2 = jax.random.PRNGKey(0)
    kp2, kx2 = jax.random.split(jax.random.fold_in(key2, 1), 2)
    batch2, seq2, d_model2 = 2, 16, 32
    mha1 = MultiHeadAttentionPallas(1, d_model2, kp2)
    x2 = jax.random.normal(kx2, (batch2, seq2, d_model2), jnp.float32)
    out2 = jax.block_until_ready(mha1(x2, x2, x2))
    ref2 = _mha_reference(mha1, x2, x2, x2)
    assert out2.shape == (batch2, seq2, d_model2)
    assert jnp.allclose(out2, ref2, atol=1e-3, rtol=1e-3), "mismatch vs reference (cfg2)"

    # Config 3: full MHSABlock usage (pos-enc + reshape), x: (b, c, h, w).
    key3 = jax.random.fold_in(jax.random.PRNGKey(0), 2)
    kp3, kx3 = jax.random.split(key3, 2)
    b3, c3, h3, w3 = 2, 32, 4, 4
    blk = MHSABlockPallas(1, c3, kp3, pos_enc=True)
    x3 = jax.random.normal(kx3, (b3, c3, h3, w3), jnp.float32)
    out3 = jax.block_until_ready(blk(x3))
    ref3 = _mhsa_block_reference(blk, x3)
    assert out3.shape == (b3, c3, h3, w3)
    assert jnp.allclose(out3, ref3, atol=1e-3, rtol=1e-3), "mismatch vs reference (cfg3)"

    print("KERNEL_OK")
</pallas_src>

<mosaic_0001>
module attributes {stable_mosaic.version = 11 : i64} {
  func.func @_mha_fused_kernel(%arg0: i32, %arg1: memref<8x32xf32, #tpu.memory_space<vmem>>, %arg2: memref<8x32xf32, #tpu.memory_space<vmem>>, %arg3: memref<8x32xf32, #tpu.memory_space<vmem>>, %arg4: memref<32x512xf32, #tpu.memory_space<vmem>>, %arg5: memref<32x512xf32, #tpu.memory_space<vmem>>, %arg6: memref<32x512xf32, #tpu.memory_space<vmem>>, %arg7: memref<512x128xf32, #tpu.memory_space<vmem>>, %arg8: memref<1x512xf32, #tpu.memory_space<vmem>>, %arg9: memref<1x512xf32, #tpu.memory_space<vmem>>, %arg10: memref<1x512xf32, #tpu.memory_space<vmem>>, %arg11: memref<1x128xf32, #tpu.memory_space<vmem>>, %arg12: memref<8x128xf32, #tpu.memory_space<vmem>>, %arg13: memref<8x512xf32, #tpu.memory_space<vmem>>) attributes {dimension_semantics = [#tpu.dimension_semantics<parallel>], iteration_bounds = array<i64: 2>, scalar_prefetch = 0 : i64, scratch_operands = 1 : i64, tpu.core_type = #tpu.core_type<tc>, window_params = [{transform_indices = @transform_0, window_bounds = array<i64: 8, 32>}, {transform_indices = @transform_1, window_bounds = array<i64: 8, 32>}, {transform_indices = @transform_2, window_bounds = array<i64: 8, 32>}, {pipeline_mode = #tpu.pipeline_mode<synchronous>, transform_indices = @transform_3, window_bounds = array<i64: 32, 512>}, {pipeline_mode = #tpu.pipeline_mode<synchronous>, transform_indices = @transform_4, window_bounds = array<i64: 32, 512>}, {pipeline_mode = #tpu.pipeline_mode<synchronous>, transform_indices = @transform_5, window_bounds = array<i64: 32, 512>}, {pipeline_mode = #tpu.pipeline_mode<synchronous>, transform_indices = @transform_6, window_bounds = array<i64: 512, 128>}, {pipeline_mode = #tpu.pipeline_mode<synchronous>, transform_indices = @transform_7, window_bounds = array<i64: 1, 512>}, {pipeline_mode = #tpu.pipeline_mode<synchronous>, transform_indices = @transform_8, window_bounds = array<i64: 1, 512>}, {pipeline_mode = #tpu.pipeline_mode<synchronous>, transform_indices = @transform_9, window_bounds = array<i64: 1, 512>}, {pipeline_mode = #tpu.pipeline_mode<synchronous>, transform_indices = @transform_10, window_bounds = array<i64: 1, 128>}, {transform_indices = @transform_11, window_bounds = array<i64: 8, 128>}]} {
    %c0 = arith.constant 0 : index
    %c0_0 = arith.constant 0 : index
    %0 = vector.load %arg1[%c0, %c0_0] : memref<8x32xf32, #tpu.memory_space<vmem>>, vector<8x32xf32>
    %c0_1 = arith.constant 0 : index
    %c0_2 = arith.constant 0 : index
    %1 = vector.load %arg2[%c0_1, %c0_2] : memref<8x32xf32, #tpu.memory_space<vmem>>, vector<8x32xf32>
    %c0_3 = arith.constant 0 : index
    %c0_4 = arith.constant 0 : index
    %2 = vector.load %arg3[%c0_3, %c0_4] : memref<8x32xf32, #tpu.memory_space<vmem>>, vector<8x32xf32>
    %c0_5 = arith.constant 0 : index
    %c0_6 = arith.constant 0 : index
    %3 = vector.load %arg4[%c0_5, %c0_6] : memref<32x512xf32, #tpu.memory_space<vmem>>, vector<32x512xf32>
    %cst = arith.constant dense<0.000000e+00> : vector<8x512xf32>
    %4 = tpu.matmul %0, %3, %cst {dimension_numbers = #tpu.dot_dimension_numbers<[1], [0], [0], [1], [0, 0, 1, 1], [], []>} : vector<8x32xf32>, vector<32x512xf32>, vector<8x512xf32> -> vector<8x512xf32>
    %c0_7 = arith.constant 0 : index
    %c0_8 = arith.constant 0 : index
    %5 = vector.load %arg8[%c0_7, %c0_8] : memref<1x512xf32, #tpu.memory_space<vmem>>, vector<1x512xf32>
    %6 = vector.broadcast %5 : vector<1x512xf32> to vector<8x512xf32>
    %7 = arith.addf %4, %6 : vector<8x512xf32>
    %c0_9 = arith.constant 0 : index
    %c0_10 = arith.constant 0 : index
    %8 = vector.load %arg5[%c0_9, %c0_10] : memref<32x512xf32, #tpu.memory_space<vmem>>, vector<32x512xf32>
    %cst_11 = arith.constant dense<0.000000e+00> : vector<8x512xf32>
    %9 = tpu.matmul %1, %8, %cst_11 {dimension_numbers = #tpu.dot_dimension_numbers<[1], [0], [0], [1], [0, 0, 1, 1], [], []>} : vector<8x32xf32>, vector<32x512xf32>, vector<8x512xf32> -> vector<8x512xf32>
    %c0_12 = arith.constant 0 : index
    %c0_13 = arith.constant 0 : index
    %10 = vector.load %arg9[%c0_12, %c0_13] : memref<1x512xf32, #tpu.memory_space<vmem>>, vector<1x512xf32>
    %11 = vector.broadcast %10 : vector<1x512xf32> to vector<8x512xf32>
    %12 = arith.addf %9, %11 : vector<8x512xf32>
    %c0_14 = arith.constant 0 : index
    %c0_15 = arith.constant 0 : index
    %13 = vector.load %arg6[%c0_14, %c0_15] : memref<32x512xf32, #tpu.memory_space<vmem>>, vector<32x512xf32>
    %cst_16 = arith.constant dense<0.000000e+00> : vector<8x512xf32>
    %14 = tpu.matmul %2, %13, %cst_16 {dimension_numbers = #tpu.dot_dimension_numbers<[1], [0], [0], [1], [0, 0, 1, 1], [], []>} : vector<8x32xf32>, vector<32x512xf32>, vector<8x512xf32> -> vector<8x512xf32>
    %c0_17 = arith.constant 0 : index
    %c0_18 = arith.constant 0 : index
    %15 = vector.load %arg10[%c0_17, %c0_18] : memref<1x512xf32, #tpu.memory_space<vmem>>, vector<1x512xf32>
    %16 = vector.broadcast %15 : vector<1x512xf32> to vector<8x512xf32>
    %17 = arith.addf %14, %16 : vector<8x512xf32>
    %18 = vector.extract_strided_slice %7 {offsets = [0, 0], sizes = [8, 128], strides = [1, 1]} : vector<8x512xf32> to vector<8x128xf32>
    %19 = vector.extract_strided_slice %12 {offsets = [0, 0], sizes = [8, 128], strides = [1, 1]} : vector<8x512xf32> to vector<8x128xf32>
    %20 = vector.extract_strided_slice %17 {offsets = [0, 0], sizes = [8, 128], strides = [1, 1]} : vector<8x512xf32> to vector<8x128xf32>
    %cst_19 = arith.constant dense<0.000000e+00> : vector<8x8xf32>
    %21 = tpu.matmul %18, %19, %cst_19 {dimension_numbers = #tpu.dot_dimension_numbers<[1], [1], [0], [0], [0, 0, 1, 0], [], []>} : vector<8x128xf32>, vector<8x128xf32>, vector<8x8xf32> -> vector<8x8xf32>
    %cst_20 = arith.constant dense<0xFF800000> : vector<8xf32>
    %22 = vector.multi_reduction <maximumf>, %21, %cst_20 [1] : vector<8x8xf32> to vector<8xf32>
    %23 = vector.shape_cast %22 : vector<8xf32> to vector<8x1xf32>
    %24 = vector.broadcast %23 : vector<8x1xf32> to vector<8x8xf32>
    %25 = arith.subf %21, %24 : vector<8x8xf32>
    %26 = math.exp %25 : vector<8x8xf32>
    %cst_21 = arith.constant dense<0.000000e+00> : vector<8xf32>
    %27 = vector.multi_reduction <add>, %26, %cst_21 [1] : vector<8x8xf32> to vector<8xf32>
    %28 = vector.shape_cast %27 : vector<8xf32> to vector<8x1xf32>
    %29 = tpu.reciprocal %28 {approx = true} : vector<8x1xf32> -> vector<8x1xf32>
    %30 = arith.mulf %28, %29 : vector<8x1xf32>
    %cst_22 = arith.constant 2.000000e+00 : f32
    %31 = vector.broadcast %cst_22 : f32 to vector<8x1xf32>
    %32 = arith.subf %31, %30 : vector<8x1xf32>
    %33 = arith.mulf %29, %32 : vector<8x1xf32>
    %cst_23 = arith.constant dense<0.000000e+00> : vector<8x128xf32>
    %34 = tpu.matmul %26, %20, %cst_23 {dimension_numbers = #tpu.dot_dimension_numbers<[1], [0], [0], [1], [0, 0, 1, 1], [], []>} : vector<8x8xf32>, vector<8x128xf32>, vector<8x128xf32> -> vector<8x128xf32>
    %35 = vector.broadcast %33 : vector<8x1xf32> to vector<8x128xf32>
    %36 = arith.mulf %34, %35 : vector<8x128xf32>
    %c0_24 = arith.constant 0 : index
    %c0_25 = arith.constant 0 : index
    %37 = vector.load %arg13[%c0_24, %c0_25] : memref<8x512xf32, #tpu.memory_space<vmem>>, vector<8x128xf32>
    tpu.vector_store %arg13[%c0_24, %c0_25], %36 {strides = array<i32>} : memref<8x512xf32, #tpu.memory_space<vmem>>, vector<8x128xf32>,
    %38 = vector.extract_strided_slice %7 {offsets = [0, 128], sizes = [8, 128], strides = [1, 1]} : vector<8x512xf32> to vector<8x128xf32>
    %39 = vector.extract_strided_slice %12 {offsets = [0, 128], sizes = [8, 128], strides = [1, 1]} : vector<8x512xf32> to vector<8x128xf32>
    %40 = vector.extract_strided_slice %17 {offsets = [0, 128], sizes = [8, 128], strides = [1, 1]} : vector<8x512xf32> to vector<8x128xf32>
    %cst_26 = arith.constant dense<0.000000e+00> : vector<8x8xf32>
    %41 = tpu.matmul %38, %39, %cst_26 {dimension_numbers = #tpu.dot_dimension_numbers<[1], [1], [0], [0], [0, 0, 1, 0], [], []>} : vector<8x128xf32>, vector<8x128xf32>, vector<8x8xf32> -> vector<8x8xf32>
    %cst_27 = arith.constant dense<0xFF800000> : vector<8xf32>
    %42 = vector.multi_reduction <maximumf>, %41, %cst_27 [1] : vector<8x8xf32> to vector<8xf32>
    %43 = vector.shape_cast %42 : vector<8xf32> to vector<8x1xf32>
    %44 = vector.broadcast %43 : vector<8x1xf32> to vector<8x8xf32>
    %45 = arith.subf %41, %44 : vector<8x8xf32>
    %46 = math.exp %45 : vector<8x8xf32>
    %cst_28 = arith.constant dense<0.000000e+00> : vector<8xf32>
    %47 = vector.multi_reduction <add>, %46, %cst_28 [1] : vector<8x8xf32> to vector<8xf32>
    %48 = vector.shape_cast %47 : vector<8xf32> to vector<8x1xf32>
    %49 = tpu.reciprocal %48 {approx = true} : vector<8x1xf32> -> vector<8x1xf32>
    %50 = arith.mulf %48, %49 : vector<8x1xf32>
    %cst_29 = arith.constant 2.000000e+00 : f32
    %51 = vector.broadcast %cst_29 : f32 to vector<8x1xf32>
    %52 = arith.subf %51, %50 : vector<8x1xf32>
    %53 = arith.mulf %49, %52 : vector<8x1xf32>
    %cst_30 = arith.constant dense<0.000000e+00> : vector<8x128xf32>
    %54 = tpu.matmul %46, %40, %cst_30 {dimension_numbers = #tpu.dot_dimension_numbers<[1], [0], [0], [1], [0, 0, 1, 1], [], []>} : vector<8x8xf32>, vector<8x128xf32>, vector<8x128xf32> -> vector<8x128xf32>
    %55 = vector.broadcast %53 : vector<8x1xf32> to vector<8x128xf32>
    %56 = arith.mulf %54, %55 : vector<8x128xf32>
    %c0_31 = arith.constant 0 : index
    %c128 = arith.constant 128 : index
    %57 = vector.load %arg13[%c0_31, %c128] : memref<8x512xf32, #tpu.memory_space<vmem>>, vector<8x128xf32>
    tpu.vector_store %arg13[%c0_31, %c128], %56 {strides = array<i32>} : memref<8x512xf32, #tpu.memory_space<vmem>>, vector<8x128xf32>,
    %58 = vector.extract_strided_slice %7 {offsets = [0, 256], sizes = [8, 128], strides = [1, 1]} : vector<8x512xf32> to vector<8x128xf32>
    %59 = vector.extract_strided_slice %12 {offsets = [0, 256], sizes = [8, 128], strides = [1, 1]} : vector<8x512xf32> to vector<8x128xf32>
    %60 = vector.extract_strided_slice %17 {offsets = [0, 256], sizes = [8, 128], strides = [1, 1]} : vector<8x512xf32> to vector<8x128xf32>
    %cst_32 = arith.constant dense<0.000000e+00> : vector<8x8xf32>
    %61 = tpu.matmul %58, %59, %cst_32 {dimension_numbers = #tpu.dot_dimension_numbers<[1], [1], [0], [0], [0, 0, 1, 0], [], []>} : vector<8x128xf32>, vector<8x128xf32>, vector<8x8xf32> -> vector<8x8xf32>
    %cst_33 = arith.constant dense<0xFF800000> : vector<8xf32>
    %62 = vector.multi_reduction <maximumf>, %61, %cst_33 [1] : vector<8x8xf32> to vector<8xf32>
    %63 = vector.shape_cast %62 : vector<8xf32> to vector<8x1xf32>
    %64 = vector.broadcast %63 : vector<8x1xf32> to vector<8x8xf32>
    %65 = arith.subf %61, %64 : vector<8x8xf32>
    %66 = math.exp %65 : vector<8x8xf32>
    %cst_34 = arith.constant dense<0.000000e+00> : vector<8xf32>
    %67 = vector.multi_reduction <add>, %66, %cst_34 [1] : vector<8x8xf32> to vector<8xf32>
    %68 = vector.shape_cast %67 : vector<8xf32> to vector<8x1xf32>
    %69 = tpu.reciprocal %68 {approx = true} : vector<8x1xf32> -> vector<8x1xf32>
    %70 = arith.mulf %68, %69 : vector<8x1xf32>
    %cst_35 = arith.constant 2.000000e+00 : f32
    %71 = vector.broadcast %cst_35 : f32 to vector<8x1xf32>
    %72 = arith.subf %71, %70 : vector<8x1xf32>
    %73 = arith.mulf %69, %72 : vector<8x1xf32>
    %cst_36 = arith.constant dense<0.000000e+00> : vector<8x128xf32>
    %74 = tpu.matmul %66, %60, %cst_36 {dimension_numbers = #tpu.dot_dimension_numbers<[1], [0], [0], [1], [0, 0, 1, 1], [], []>} : vector<8x8xf32>, vector<8x128xf32>, vector<8x128xf32> -> vector<8x128xf32>
    %75 = vector.broadcast %73 : vector<8x1xf32> to vector<8x128xf32>
    %76 = arith.mulf %74, %75 : vector<8x128xf32>
    %c0_37 = arith.constant 0 : index
    %c256 = arith.constant 256 : index
    %77 = vector.load %arg13[%c0_37, %c256] : memref<8x512xf32, #tpu.memory_space<vmem>>, vector<8x128xf32>
    tpu.vector_store %arg13[%c0_37, %c256], %76 {strides = array<i32>} : memref<8x512xf32, #tpu.memory_space<vmem>>, vector<8x128xf32>,
    %78 = vector.extract_strided_slice %7 {offsets = [0, 384], sizes = [8, 128], strides = [1, 1]} : vector<8x512xf32> to vector<8x128xf32>
    %79 = vector.extract_strided_slice %12 {offsets = [0, 384], sizes = [8, 128], strides = [1, 1]} : vector<8x512xf32> to vector<8x128xf32>
    %80 = vector.extract_strided_slice %17 {offsets = [0, 384], sizes = [8, 128], strides = [1, 1]} : vector<8x512xf32> to vector<8x128xf32>
    %cst_38 = arith.constant dense<0.000000e+00> : vector<8x8xf32>
    %81 = tpu.matmul %78, %79, %cst_38 {dimension_numbers = #tpu.dot_dimension_numbers<[1], [1], [0], [0], [0, 0, 1, 0], [], []>} : vector<8x128xf32>, vector<8x128xf32>, vector<8x8xf32> -> vector<8x8xf32>
    %cst_39 = arith.constant dense<0xFF800000> : vector<8xf32>
    %82 = vector.multi_reduction <maximumf>, %81, %cst_39 [1] : vector<8x8xf32> to vector<8xf32>
    %83 = vector.shape_cast %82 : vector<8xf32> to vector<8x1xf32>
    %84 = vector.broadcast %83 : vector<8x1xf32> to vector<8x8xf32>
    %85 = arith.subf %81, %84 : vector<8x8xf32>
    %86 = math.exp %85 : vector<8x8xf32>
    %cst_40 = arith.constant dense<0.000000e+00> : vector<8xf32>
    %87 = vector.multi_reduction <add>, %86, %cst_40 [1] : vector<8x8xf32> to vector<8xf32>
    %88 = vector.shape_cast %87 : vector<8xf32> to vector<8x1xf32>
    %89 = tpu.reciprocal %88 {approx = true} : vector<8x1xf32> -> vector<8x1xf32>
    %90 = arith.mulf %88, %89 : vector<8x1xf32>
    %cst_41 = arith.constant 2.000000e+00 : f32
    %91 = vector.broadcast %cst_41 : f32 to vector<8x1xf32>
    %92 = arith.subf %91, %90 : vector<8x1xf32>
    %93 = arith.mulf %89, %92 : vector<8x1xf32>
    %cst_42 = arith.constant dense<0.000000e+00> : vector<8x128xf32>
    %94 = tpu.matmul %86, %80, %cst_42 {dimension_numbers = #tpu.dot_dimension_numbers<[1], [0], [0], [1], [0, 0, 1, 1], [], []>} : vector<8x8xf32>, vector<8x128xf32>, vector<8x128xf32> -> vector<8x128xf32>
    %95 = vector.broadcast %93 : vector<8x1xf32> to vector<8x128xf32>
    %96 = arith.mulf %94, %95 : vector<8x128xf32>
    %c0_43 = arith.constant 0 : index
    %c384 = arith.constant 384 : index
    %97 = vector.load %arg13[%c0_43, %c384] : memref<8x512xf32, #tpu.memory_space<vmem>>, vector<8x128xf32>
    tpu.vector_store %arg13[%c0_43, %c384], %96 {strides = array<i32>} : memref<8x512xf32, #tpu.memory_space<vmem>>, vector<8x128xf32>,
    %c0_44 = arith.constant 0 : index
    %c0_45 = arith.constant 0 : index
    %98 = vector.load %arg13[%c0_44, %c0_45] : memref<8x512xf32, #tpu.memory_space<vmem>>, vector<8x512xf32>
    %c0_46 = arith.constant 0 : index
    %c0_47 = arith.constant 0 : index
    %99 = vector.load %arg7[%c0_46, %c0_47] : memref<512x128xf32, #tpu.memory_space<vmem>>, vector<512x128xf32>
    %cst_48 = arith.constant dense<0.000000e+00> : vector<8x128xf32>
    %100 = tpu.matmul %98, %99, %cst_48 {dimension_numbers = #tpu.dot_dimension_numbers<[1], [0], [0], [1], [0, 0, 1, 1], [], []>} : vector<8x512xf32>, vector<512x128xf32>, vector<8x128xf32> -> vector<8x128xf32>
    %c0_49 = arith.constant 0 : index
    %c0_50 = arith.constant 0 : index
    %101 = vector.load %arg11[%c0_49, %c0_50] : memref<1x128xf32, #tpu.memory_space<vmem>>, vector<1x128xf32>
    %102 = vector.broadcast %101 : vector<1x128xf32> to vector<8x128xf32>
    %103 = arith.addf %100, %102 : vector<8x128xf32>
    %c0_51 = arith.constant 0 : index
    %c0_52 = arith.constant 0 : index
    %104 = vector.load %arg12[%c0_51, %c0_52] : memref<8x128xf32, #tpu.memory_space<vmem>>, vector<8x128xf32>
    tpu.vector_store %arg12[%c0_51, %c0_52], %103 {strides = array<i32>} : memref<8x128xf32, #tpu.memory_space<vmem>>, vector<8x128xf32>,
    return
  }
  func.func @transform_0(%arg0: i32) -> (i32, i32) {
    %c0_i32 = arith.constant 0 : i32
    %c0_i32_0 = arith.constant 0 : i32
    return %arg0, %c0_i32 : i32, i32
  }
  func.func @transform_1(%arg0: i32) -> (i32, i32) {
    %c0_i32 = arith.constant 0 : i32
    %c0_i32_0 = arith.constant 0 : i32
    return %arg0, %c0_i32 : i32, i32
  }
  func.func @transform_2(%arg0: i32) -> (i32, i32) {
    %c0_i32 = arith.constant 0 : i32
    %c0_i32_0 = arith.constant 0 : i32
    return %arg0, %c0_i32 : i32, i32
  }
  func.func @transform_3(%arg0: i32) -> (i32, i32) {
    %c0_i32 = arith.constant 0 : i32
    %c0_i32_0 = arith.constant 0 : i32
    %c0_i32_1 = arith.constant 0 : i32
    return %c0_i32, %c0_i32_0 : i32, i32
  }
  func.func @transform_4(%arg0: i32) -> (i32, i32) {
    %c0_i32 = arith.constant 0 : i32
    %c0_i32_0 = arith.constant 0 : i32
    %c0_i32_1 = arith.constant 0 : i32
    return %c0_i32, %c0_i32_0 : i32, i32
  }
  func.func @transform_5(%arg0: i32) -> (i32, i32) {
    %c0_i32 = arith.constant 0 : i32
    %c0_i32_0 = arith.constant 0 : i32
    %c0_i32_1 = arith.constant 0 : i32
    return %c0_i32, %c0_i32_0 : i32, i32
  }
  func.func @transform_6(%arg0: i32) -> (i32, i32) {
    %c0_i32 = arith.constant 0 : i32
    %c0_i32_0 = arith.constant 0 : i32
    %c0_i32_1 = arith.constant 0 : i32
    return %c0_i32, %c0_i32_0 : i32, i32
  }
  func.func @transform_7(%arg0: i32) -> (i32, i32) {
    %c0_i32 = arith.constant 0 : i32
    %c0_i32_0 = arith.constant 0 : i32
    %c0_i32_1 = arith.constant 0 : i32
    return %c0_i32, %c0_i32_0 : i32, i32
  }
  func.func @transform_8(%arg0: i32) -> (i32, i32) {
    %c0_i32 = arith.constant 0 : i32
    %c0_i32_0 = arith.constant 0 : i32
    %c0_i32_1 = arith.constant 0 : i32
    return %c0_i32, %c0_i32_0 : i32, i32
  }
  func.func @transform_9(%arg0: i32) -> (i32, i32) {
    %c0_i32 = arith.constant 0 : i32
    %c0_i32_0 = arith.constant 0 : i32
    %c0_i32_1 = arith.constant 0 : i32
    return %c0_i32, %c0_i32_0 : i32, i32
  }
  func.func @transform_10(%arg0: i32) -> (i32, i32) {
    %c0_i32 = arith.constant 0 : i32
    %c0_i32_0 = arith.constant 0 : i32
    %c0_i32_1 = arith.constant 0 : i32
    return %c0_i32, %c0_i32_0 : i32, i32
  }
  func.func @transform_11(%arg0: i32) -> (i32, i32) {
    %c0_i32 = arith.constant 0 : i32
    %c0_i32_0 = arith.constant 0 : i32
    return %arg0, %c0_i32 : i32, i32
  }
}

</mosaic_0001>

<bundles_post_ra>
// kernel: tpu_custom_call.1
= control target key start
LH: loop header
LB: loop body
LE: loop exit
PB: predicated region body
PF: predicated region fallthrough
CT: control target
= control target key end

     0   :  { %s2304_s0 = inlined_call_operand.hbm [shape: f32[16,32], index: 0, kind: input, shape index: {}]   ;;  %s2305_s1 = inlined_call_operand.hbm [shape: f32[16,32], index: 1, kind: input, shape index: {}]   ;;  %s2306_s2 = inlined_call_operand.hbm [shape: f32[16,32], index: 2, kind: input, shape index: {}]   ;;  %s2307_s3 = inlined_call_operand.hbm [shape: f32[32,512], index: 3, kind: input, shape index: {}]   ;;  %s2308_s4 = inlined_call_operand.hbm [shape: f32[32,512], index: 4, kind: input, shape index: {}]   ;;  %s2309_s5 = inlined_call_operand.hbm [shape: f32[32,512], index: 5, kind: input, shape index: {}]   ;;  %s2310_s6 = inlined_call_operand.hbm [shape: f32[512,128], index: 6, kind: input, shape index: {}]   ;;  %s2311_s7 = inlined_call_operand.vmem [shape: f32[1,512], index: 7, kind: input, shape index: {}]   ;;  %s2312_s8 = inlined_call_operand.hbm [shape: f32[1,512], index: 8, kind: input, shape index: {}]   ;;  %s2313_s9 = inlined_call_operand.vmem [shape: f32[1,512], index: 9, kind: input, shape index: {}]   ;;  %s2314_s10 = inlined_call_operand.vmem [shape: f32[1,128], index: 10, kind: input, shape index: {}]   ;;  %s2315_s11 = inlined_call_operand.hbm [shape: f32[16,128], index: 11, kind: output, shape index: {}]  }
   0x1   :  { %2328 = sst [smem:[#allocation30_spill]] %s2305_s1 }
   0x2   :  { %2329 = sst [smem:[#allocation31_spill]] %s2307_s3 }
   0x3   :  { %2330 = sst [smem:[#allocation32_spill]] %s2308_s4 }
   0x4   :  { %2331 = sst [smem:[#allocation33_spill]] %s2309_s5 }
   0x5   :  { %2332 = sst [smem:[#allocation34_spill]] %s2310_s6 }
   0x6   :  { %2333 = sst [smem:[#allocation35_spill]] %s2315_s11 }
   0x7   :  { %16 = vsyncpa [#allocation4], 0 }
   0x8   :  { %18 = vsyncpa [#allocation4 + $0x1], 0 }
   0x9   :  { %19 = vsyncpa [#allocation7], 0 }
   0xa   :  { %21 = vsyncpa [#allocation7 + $0x1], 0 }
   0xb   :  { %22 = vsyncpa [#allocation10], 0 }
   0xc   :  { %23 = vsyncpa [#allocation13], 0 }
   0xd   :  { %24 = vsyncpa [#allocation16], 0 }
   0xe   :  { %25 = vsyncpa [#allocation5], 0 }
   0xf   :  { %27 = vsyncpa [#allocation5 + $0x1], 0  ;;  %s2019_s17 = smov 0   ;;  %s2021_s18 = smov 0  }
  0x10   :  { %s2023_s19 = smov 0   ;;  %s2025_s20 = smov 0  }
  0x11 LB: > { %2334 = sst [smem:[#allocation24_spill]] %s1936_s17  ;;  %s2043_s24 = sadd.s32 4294967295, %s1948_s20   ;;  %s1948_s20 = sphi %s2025_s20, %s2366_s20   ;;  %s1944_s19 = sphi %s2023_s19, %s2370_s19   ;;  %s1940_s18 = sphi %s2021_s18, %s2369_s18   ;;  %s1936_s17 = sphi %s2019_s17, %s2368_s17  }
  0x12   : > { %2335 = sst [smem:[#allocation25_spill]] %s1948_s20  ;;  %p1455_p0 = scmp.ge.s32.totalorder %s1948_s20, 1 }
  0x13   : > { %s2336_s3 = sld [smem:[#allocation31_spill]]  ;;  %p2324_p1 = scmp.eq.s32.totalorder %s2043_s24, 0 }
  0x14   : > { %p310_p2 = scmp.lt.s32.totalorder %s1948_s20, 3  ;;  %s1950_s26 = smov [#allocation9]  }
  0x15   : > { %s323_s27 = sshll.u32 %s1950_s26, 4  ;;  %s2338_s5 = sld [smem:[#allocation33_spill]]  ;;  %s324_s27 = int_to_ptr.vmem [resolvable:$true] %s323_s27 }
  0x16   : > { %p2048_p3 = pnand %p1455_p0, %p310_p2  ;;  %s1951_s13 = smov [#allocation12]  }
  0x17   : > { %s351_s14 = sshll.u32 %s1951_s13, 4  ;;  %s2316_s15 = smov 512   ;;  %s352_s14 = int_to_ptr.vmem [resolvable:$true] %s351_s14 }
  0x18   : > { %p1526_p4 = pneg %p2048_p3  ;;  %s2317_s16 = smov 32  }
  0x19   : > { %s321_s23 = sshll.u32 %s2336_s3, 4  ;;  %s1454_s21 = sadd.s32 4294967294, %s1948_s20   ;;  %s322_s23 = int_to_ptr.hbm [resolvable:$true] %s321_s23 }
  0x1a   : > { %p2060_p6 = pnand %p1526_p4, %p2324_p1  ;;  %s2076_s22 = sadd.s32 1, %s1948_s20  }
  0x1b   : > { %s349_s30 = sshll.u32 %s2338_s5, 4  ;;  %2340 = sst [smem:[#allocation26_spill]] %s2076_s22  ;;  %s350_s30 = int_to_ptr.hbm [resolvable:$true] %s349_s30 }
  0x1c   : > { %1529 = dma.hbm_to_vmem [thread:$0]  (!%p2060_p6), %s322_s23, 2048, %s324_s27, [#allocation10], %s2316_s15, %s2316_s15, %s2317_s16  }
  0x1d   : > { %1535 = dma.hbm_to_vmem [thread:$0]  (!%p2060_p6), %s350_s30, 2048, %s352_s14, [#allocation13], %s2316_s15, %s2316_s15, %s2317_s16  }
  0x1e   : > { %s37_s26 = ssub.s32 %s1948_s20, %s2076_s22  ;;  %s40_s28 = sadd.s32 1, %s1944_s19 }
  0x1f   : > { %p38_p7 = scmp.eq.s32.totalorder %s37_s26, 0  ;;  %p47_p8 = scmp.ne.s32.totalorder %s1944_s19, %s1940_s18 }
  0x20   : > { %p48_p9 = scmp.eq.s32.totalorder %s1948_s20, 0  ;;  %p53_p10 = scmp.ne.s32.totalorder %s1940_s18, %s1936_s17 }
  0x21   : > { %s2087_s23 = scalar_select %p38_p7, %s1944_s19, %s40_s28  }
  0x22   : > { %p49_p11 = por %p48_p9, %p47_p8  ;;  %p2091_p12 = por %p2324_p1, %p53_p10 }
  0x23   : > { %2341 = sst [smem:[#allocation27_spill]] %s2087_s23  ;;  %p297_p13 = scmp.eq.s32.totalorder %s2043_s24, 1 }
  0x24   : > { %p303_p0 = scmp.eq.s32.totalorder %s1454_s21, 1  ;;  %p1561_p2 = scmp.lt.s32.totalorder %s1948_s20, 2 }
  0x25   : > { %s2320_s29 = sand.u32 1, %s1944_s19   ;;  %p2098_p4 = por %p297_p13, %p47_p8 }
  0x26   : > { %p2102_p5 = por %p303_p0, %p53_p10  ;;  %s2108_s14 = sshll.u32 %s2320_s29, 3 }
  0x27   : > { %s2343_s30 = scalar_select %p2098_p4, 1, 0 }
  0x28   : > { %s2345_s13 = scalar_select %p2102_p5, 1, 0 }
  0x29   : > { %2344 = sst [smem:[#allocation28_spill]] %s2343_s30  ;;  %s2111_s26 = sshll.u32 %s1948_s20, 3 }
  0x2a   : > { %2346 = sst [smem:[#allocation29_spill]] %s2345_s13  ;;  %p2113_p7 = pnand %p1561_p2, %p49_p11 }
  0x2b   : > { %s419_s21 = sand.u32 1, %s1948_s20   ;;  %s2348_s1 = sld [smem:[#allocation30_spill]] }
  0x2c   : > { %s423_s23 = scalar_lea.vmem [#allocation6], %s2108_s14  ;;  %s2123_s29 = scalar_lea.sflag [#allocation7], %s419_s21 }
  0x2d   : > { %s431_s22 = sshll.u32 %s423_s23, 4  ;;  %p1690_p9 = pneg %p2113_p7  ;;  %s432_s22 = int_to_ptr.vmem [resolvable:$true] %s431_s22 }
  0x31   : > { %s427_s3 = scalar_lea.hbm %s2348_s1, %s2111_s26 }
  0x32   : > { %s429_s5 = sshll.u32 %s427_s3, 4  ;;  %s1693_s3 = scalar_lea.hbm %s2348_s1, 16  ;;  %s430_s5 = int_to_ptr.hbm [resolvable:$true] %s429_s5 }
  0x33   : > { %s1686_s13 = sshra.s32 %s430_s5, 4  ;;  %s1687_s13 = int_to_ptr.hbm [resolvable:$true] %s1686_s13 }
  0x34   : > { %s1688_s17 = scalar_lea.hbm %s1687_s13, 8  ;;  %p1694_p13 = scmp.lt.s32.totalorder %s1687_s13, %s2348_s1 }
  0x35   : > { %p1689_p8 = scmp.ne.s32.totalorder %s1687_s13, %s1688_s17  ;;  %p1695_p0 = scmp.lt.s32.totalorder %s1693_s3, %s1688_s17 }
  0x37   : > { %p1691_p10 = pnand %p1690_p9, %p1689_p8  ;;  %p1696_p2 = por %p1695_p0, %p1694_p13 }
  0x39   : > { %p1692_p11 = pneg %p1691_p10 }
  0x3b   : > { %p1697_p1 = pnand %p1696_p2, %p1692_p11 }
  0x3d   : > { %1700 = shalt.err (!%p1697_p1)
}
  0x3e   : > { %1548 = dma.hbm_to_vmem [thread:$0]  (!%p2113_p7), %s430_s5, 128, %s432_s22, %s2123_s29  }
  0x3f   : > { %s2349_s4 = sld [smem:[#allocation32_spill]]  ;;  %s1954_s20 = smov [#allocation11]  }
  0x40   : > { %s337_s15 = sshll.u32 %s1954_s20, 4  ;;  %s2350_s6 = sld [smem:[#allocation34_spill]]  ;;  %s338_s15 = int_to_ptr.vmem [resolvable:$true] %s337_s15 }
  0x41   : > { %s2351_s16 = smov 32   ;;  %s2352_s23 = smov 512  }
  0x42   : > { %s1955_s5 = smov [#allocation14]   ;;  %s1956_s30 = smov 128  }
  0x43   : > { %s365_s22 = sshll.u32 %s1955_s5, 4  ;;  %s1957_s21 = smov 8   ;;  %s366_s22 = int_to_ptr.vmem [resolvable:$true] %s365_s22 }
  0x44   : > { %s381_s13 = sshll.u32 %s2312_s8, 4  ;;  %s1958_s17 = smov [#allocation15]   ;;  %s382_s13 = int_to_ptr.hbm [resolvable:$true] %s381_s13 }
  0x45   : > { %s335_s11 = sshll.u32 %s2349_s4, 4  ;;  %s383_s4 = sshll.u32 %s1958_s17, 4  ;;  %s336_s11 = int_to_ptr.hbm [resolvable:$true] %s335_s11  ;;  %s384_s4 = int_to_ptr.vmem [resolvable:$true] %s383_s4 }
  0x46   : > { %s363_s3 = sshll.u32 %s2350_s6, 4  ;;  %s404_s5 = scalar_lea.vmem [#allocation3], %s2108_s14  ;;  %s364_s3 = int_to_ptr.hbm [resolvable:$true] %s363_s3 }
  0x47   : > { %1532 = dma.hbm_to_vmem [thread:$0]  (!%p2060_p6), %s336_s11, 2048, %s338_s15, [#allocation10], %s2352_s23, %s2352_s23, %s2351_s16  }
  0x48   : > { %1538 = dma.hbm_to_vmem [thread:$0]  (!%p2060_p6), %s364_s3, 8192, %s366_s22, [#allocation13], %s1956_s30, %s1956_s30, %s1957_s21  }
  0x49   : > { %1541 = dma.hbm_to_vmem [thread:$0]  (!%p2060_p6), %s382_s13, 64, %s384_s4, [#allocation16]  }
  0x4a   : > { %s408_s16 = scalar_lea.hbm %s2304_s0, %s2111_s26  ;;  %s412_s6 = sshll.u32 %s404_s5, 4  ;;  %s413_s6 = int_to_ptr.vmem [resolvable:$true] %s412_s6 }
  0x4b   : > { %s410_s23 = sshll.u32 %s408_s16, 4  ;;  %s2353_s3 = sand.u32 1, %s1944_s19   ;;  %s411_s23 = int_to_ptr.hbm [resolvable:$true] %s410_s23 }
  0x4c   : > { %s401_s22 = scalar_lea.sflag [#allocation4], %s2353_s3  ;;  %s1806_s1 = sshra.s32 %s411_s23, 4  ;;  %s1807_s1 = int_to_ptr.hbm [resolvable:$true] %s1806_s1 }
  0x4d   : > { %s1808_s30 = scalar_lea.hbm %s1807_s1, 8  ;;  %s1813_s21 = scalar_lea.hbm %s2304_s0, 16 }
  0x4e   : > { %p1809_p1 = scmp.ne.s32.totalorder %s1807_s1, %s1808_s30  ;;  %p1814_p6 = scmp.lt.s32.totalorder %s1807_s1, %s2304_s0 }
  0x4f   : > { %p1815_p11 = scmp.lt.s32.totalorder %s1813_s21, %s1808_s30 }
  0x50   : > { %p1811_p8 = pnand %p1809_p1, %p1690_p9 }
  0x51   : > { %p1816_p13 = por %p1815_p11, %p1814_p6 }
  0x52   : > { %p1812_p10 = pneg %p1811_p8 }
  0x54   : > { %p1817_p0 = pnand %p1816_p13, %p1812_p10 }
  0x56   : > { %1820 = shalt.err (!%p1817_p0)
}
  0x57   : > { %1545 = dma.hbm_to_vmem [thread:$0]  (!%p2113_p7), %s411_s23, 128, %s413_s6, %s401_s22  }
  0x58   : > { %s446_s15 = scalar_lea.hbm %s2306_s2, %s2111_s26  ;;  %s442_s5 = scalar_lea.vmem [#allocation8], %s2108_s14 }
  0x59   : > { %s448_s16 = sshll.u32 %s446_s15, 4  ;;  %s450_s3 = sshll.u32 %s442_s5, 4  ;;  %s449_s16 = int_to_ptr.hbm [resolvable:$true] %s448_s16  ;;  %s451_s3 = int_to_ptr.vmem [resolvable:$true] %s450_s3 }
  0x5a   : > { %s1836_s1 = sshra.s32 %s449_s16, 4  ;;  %s1843_s6 = scalar_lea.hbm %s2306_s2, 16  ;;  %s1837_s1 = int_to_ptr.hbm [resolvable:$true] %s1836_s1 }
  0x5b   : > { %s1838_s30 = scalar_lea.hbm %s1837_s1, 8  ;;  %p1844_p10 = scmp.lt.s32.totalorder %s1837_s1, %s2306_s2 }
  0x5c   : > { %p1839_p2 = scmp.ne.s32.totalorder %s1837_s1, %s1838_s30  ;;  %p1845_p6 = scmp.lt.s32.totalorder %s1843_s6, %s1838_s30 }
  0x5e   : > { %p1841_p1 = pnand %p1839_p2, %p1690_p9  ;;  %p1846_p11 = por %p1845_p6, %p1844_p10 }
  0x60   : > { %p1842_p8 = pneg %p1841_p1 }
  0x62   : > { %p1847_p13 = pnand %p1846_p11, %p1842_p8 }
  0x64   : > { %1850 = shalt.err (!%p1847_p13)
}
  0x65   : > { %1551 = dma.hbm_to_vmem [thread:$0]  (!%p2113_p7), %s449_s16, 128, %s451_s3, %s2123_s29  }
  0x66   : > { %459 = sbr.rel (%p2048_p3) target bundleno = 822 (0x336), region = 64  ;;  %s2195_s14 = sand.u32 (!%p2048_p3), 1, %s1940_s18  }
  0x67   : > { %s2198_s26 = sshll.u32 (!%p2048_p3), %s2195_s14, 3  ;;  %s462_s21 = scalar_lea.sflag (!%p2048_p3), [#allocation4], %s2195_s14 }
  0x68   : > { %s465_s20 = scalar_lea.vmem (!%p2048_p3), [#allocation3], %s2198_s26 }
  0x6b   : > { %1911 = dma.done.wait (%p2091_p12), %s462_s21, 128  }
  0x6c   : > { %1913 = vsyncadd (%p2091_p12), %s462_s21, 4294967168  ;;  %s471_s25 = sand.u32 1, %s2043_s24   ;;  %s475_s28 = scalar_lea.vmem [#allocation6], %s2198_s26 }
  0x6d   : > { %s472_s29 = scalar_lea.sflag [#allocation7], %s471_s25 }
  0x6e   : > { %1915 = dma.done.wait (%p2091_p12), %s472_s29, 256  }
  0x6f   : > { %1917 = vsyncadd (%p2091_p12), %s472_s29, 4294967040  ;;  %s485_s13 = scalar_lea.vmem [#allocation8], %s2198_s26  ;;  %p2354_p3 = scmp.eq.s32.totalorder %s2043_s24, 0 }
  0x71   : > { %1919 = dma.done.wait (%p2354_p3), [#allocation10], 4096   ;;  %p2355_p7 = pmov %p2354_p3 }
  0x72   : > { %p2356_p9 = pmov %p2354_p3 }
  0x73   : > { %1921 = vsyncadd (%p2355_p7), [#allocation10], 4294963200 }
  0x74   : > { %1923 = dma.done.wait (%p2356_p9), [#allocation13], 10240   ;;  %p2357_p0 = pmov %p2354_p3 }
  0x76   : > { %1925 = vsyncadd (%p2357_p0), [#allocation13], 4294957056  ;;  %p2358_p2 = pmov %p2357_p0 }
  0x77   : > { %p2359_p1 = pmov %p2357_p0 }
  0x78   : > { %1927 = dma.done.wait (%p2358_p2), [#allocation16], 64  }
  0x79   : > { %1929 = vsyncadd (%p2359_p1), [#allocation16], 4294967232  ;;  %v576_v0 = vld [vmem:[#allocation9 + $0x68] sm:$0xff]  ;;  %v578_v2 = vld [vmem:[#allocation9 + $0x78] sm:$0xff]  ;;  %vm589_vm0 = vcmask 261120   ;;  %vm911_vm1 = vcmask 64512  }
  0x7a   : > { %v572_v1 = vld [vmem:[#allocation9 + $0x48] sm:$0xff]  ;;  %625 = vmatpush.msra.mxu1 %v576_v0  ;;  %665 = vmatpush.msra.mxu3 %v578_v2  ;;  %v575_v3 = vld [vmem:[#allocation9 + $0x60] sm:$0xff]  ;;  %v574_v4 = vld [vmem:[#allocation9 + $0x58] sm:$0xff]  ;;  %s1495_s3 = sshll.u32 %s2043_s24, 3  ;;  %s2360_s4 = sld [smem:[#allocation35_spill]] }
  0x7b   : > { %605 = vmatpush.msra.mxu0 %v575_v3  ;;  %v568_v5 = vld [vmem:[#allocation9 + $0x28] sm:$0xff]  ;;  %v571_v6 = vld [vmem:[#allocation9 + $0x40] sm:$0xff]  ;;  %v577_v7 = vld [vmem:[#allocation9 + $0x70] sm:$0xff]  ;;  %s559_s23 = scalar_lea.vmem [#allocation17], %s2198_s26  ;;  %s1278_s24 = scalar_lea.sflag [#allocation5], %s2195_s14 }
  0x7c   : > { %626 = vmatpush.msra.mxu1 %v572_v1  ;;  %666 = vmatpush.msra.mxu3 %v574_v4  ;;  %v570_v8 = vld [vmem:[#allocation9 + $0x38] sm:$0xff]  ;;  %v567_v9 = vld [vmem:[#allocation9 + $0x20] sm:$0xff]  ;;  %v564_v10 = vld [vmem:[#allocation9 + $0x8] sm:$0xff]  ;;  %s1290_s22 = sshll.u32 %s559_s23, 4  ;;  %s1291_s22 = int_to_ptr.vmem [resolvable:$true] %s1290_s22 }
  0x7d   : > { %606 = vmatpush.msra.mxu0 %v571_v6  ;;  %645 = vmatpush.msra.mxu2 %v577_v7  ;;  %v573_v11 = vld [vmem:[#allocation9 + $0x50] sm:$0xff]  ;;  %v566_v12 = vld [vmem:[#allocation9 + $0x18] sm:$0xff]  ;;  %v563_v14 = vld [vmem:[#allocation9] sm:$0xff] }
  0x7e   : > { %627 = vmatpush.msra.mxu1 %v568_v5  ;;  %667 = vmatpush.msra.mxu3 %v570_v8  ;;  %v560_v13 = vld [vmem:[%s465_s20] sm:$0xff]  ;;  %v686_v15 = vld [vmem:[#allocation11 + $0x68] sm:$0xff]  ;;  %v685_v20 = vld [vmem:[#allocation11 + $0x60] sm:$0xff] }
  0x7f   : > { %607 = vmatpush.msra.mxu0 %v567_v9  ;;  %646 = vmatpush.msra.mxu2 %v573_v11  ;;  %v569_v16 = vld [vmem:[#allocation9 + $0x30] sm:$0xff]  ;;  %v682_v17 = vld [vmem:[#allocation11 + $0x48] sm:$0xff]  ;;  %v688_v18 = vld [vmem:[#allocation11 + $0x78] sm:$0xff] }
  0x80   : > { %628 = vmatpush.msra.mxu1 %v564_v10  ;;  %668 = vmatpush.msra.mxu3 %v566_v12  ;;  %v565_v19 = vld [vmem:[#allocation9 + $0x10] sm:$0xff]  ;;  %v678_v21 = vld [vmem:[#allocation11 + $0x28] sm:$0xff]  ;;  %v684_v22 = vld [vmem:[#allocation11 + $0x58] sm:$0xff]  ;;  %s1288_s12 = scalar_lea.hbm %s2360_s4, %s1495_s3  ;;  %s1886_s26 = scalar_lea.hbm %s2360_s4, 16 }
  0x81   : > { %1479 = vmatmul.msk.f32.vlgmr.msra.gmra.mxu1 %vm589_vm0, %v560_v13  ;;  %608 = vmatpush.msra.mxu0 %v563_v14  ;;  %v681_v23 = vld [vmem:[#allocation11 + $0x40] sm:$0xff]  ;;  %v687_v24 = vld [vmem:[#allocation11 + $0x70] sm:$0xff]  ;;  %v674_v25 = vld [vmem:[#allocation11 + $0x8] sm:$0xff]  ;;  %s1292_s21 = sshll.u32 %s1288_s12, 4  ;;  %s1293_s21 = int_to_ptr.hbm [resolvable:$true] %s1292_s21 }
  0x82   : > { %734 = vmatpush.msrb.mxu1 %v686_v15  ;;  %647 = vmatpush.msra.mxu2 %v569_v16  ;;  %v680_v26 = vld [vmem:[#allocation11 + $0x38] sm:$0xff]  ;;  %v677_v27 = vld [vmem:[#allocation11 + $0x20] sm:$0xff]  ;;  %v683_v29 = vld [vmem:[#allocation11 + $0x50] sm:$0xff]  ;;  %s1880_s20 = sshra.s32 %s1293_s21, 4  ;;  %s1881_s20 = int_to_ptr.hbm [resolvable:$true] %s1880_s20 }
  0x83   : > { %1481 = vmatmul.msk.f32.vlgmr.msra.gmra.mxu3 %vm589_vm0, %v560_v13  ;;  %1478 = vmatmul.msk.f32.vlgmr.msra.gmra.mxu0 %vm589_vm0, %v560_v13  ;;  %v561_v28 = vld [vmem:[%s475_s28] sm:$0xff]  ;;  %v676_v30 = vld [vmem:[#allocation11 + $0x18] sm:$0xff]  ;;  %v679_v32 = vld [vmem:[#allocation11 + $0x30] sm:$0xff]  ;;  %s1882_s25 = scalar_lea.hbm %s1881_s20, 8  ;;  %p1887_p6 = scmp.lt.s32.totalorder %s1881_s20, %s2360_s4 }
  0x84   : > { %735 = vmatpush.msrb.mxu1 %v682_v17  ;;  %774 = vmatpush.msrb.mxu3 %v688_v18  ;;  %v673_v31 = vld [vmem:[#allocation11] sm:$0xff]  ;;  %v675_v33 = vld [vmem:[#allocation11 + $0x10] sm:$0xff]  ;;  %v795_v5 = vld [vmem:[#allocation12 + $0x68] sm:$0xff]  ;;  %p1883_p12 = scmp.ne.s32.totalorder %s1881_s20, %s1882_s25  ;;  %p1888_p11 = scmp.lt.s32.totalorder %s1886_s26, %s1882_s25 }
  0x85   : > { %648 = vmatpush.msra.mxu2 %v565_v19  ;;  %714 = vmatpush.msrb.mxu0 %v685_v20  ;;  %v796_v34 = vld [vmem:[#allocation12 + $0x70] sm:$0xff]  ;;  %v794_v36 = vld [vmem:[#allocation12 + $0x60] sm:$0xff]  ;;  %v791_v6 = vld [vmem:[#allocation12 + $0x48] sm:$0xff] }
  0x86   : > { %1480 = vmatmul.msk.f32.vlgmr.msra.gmra.mxu2 %vm589_vm0, %v560_v13  ;;  %736 = vmatpush.msrb.mxu1 %v678_v21  ;;  %v792_v35 = vld [vmem:[#allocation12 + $0x50] sm:$0xff]  ;;  %v790_v38 = vld [vmem:[#allocation12 + $0x40] sm:$0xff]  ;;  %v797_v7 = vld [vmem:[#allocation12 + $0x78] sm:$0xff]  ;;  %p1884_p8 = pnand %p1883_p12, %p2098_p4  ;;  %p1889_p13 = por %p1888_p11, %p1887_p6 }
  0x87   : > { %775 = vmatpush.msrb.mxu3 %v684_v22  ;;  %715 = vmatpush.msrb.mxu0 %v681_v23  ;;  %v788_v37 = vld [vmem:[#allocation12 + $0x30] sm:$0xff]  ;;  %v786_v40 = vld [vmem:[#allocation12 + $0x20] sm:$0xff]  ;;  %v787_v8 = vld [vmem:[#allocation12 + $0x28] sm:$0xff] }
  0x88   : > { %754 = vmatpush.msrb.mxu2 %v687_v24  ;;  %737 = vmatpush.msrb.mxu1 %v674_v25  ;;  %v784_v39 = vld [vmem:[#allocation12 + $0x10] sm:$0xff]  ;;  %v782_v42 = vld [vmem:[#allocation12] sm:$0xff]  ;;  %v793_v9 = vld [vmem:[#allocation12 + $0x58] sm:$0xff]  ;;  %p1885_p10 = pneg %p1884_p8 }
  0x89   : > { %776 = vmatpush.msrb.mxu3 %v680_v26  ;;  %716 = vmatpush.msrb.mxu0 %v677_v27  ;;  %v2239_v41 = vld [vmem:[%s485_s13] sm:$0xff]  ;;  %v689_v45 = vld [vmem:[#allocation15] sm:$0xf]  ;;  %v783_v16 = vld [vmem:[#allocation12 + $0x8] sm:$0xff] }
  0x8a   : > { %1483 = vmatmul.msk.f32.vlgmr.msrb.gmra.mxu1 %vm589_vm0, %v561_v28  ;;  %755 = vmatpush.msrb.mxu2 %v683_v29  ;;  %v579_v46 = vld [vmem:[%s2311_s7] sm:$0xf]  ;;  %v692_v47 = vperm.slane %v689_v45, 1  ;;  %v691_v51 = vperm.slane %v689_v45, 0  ;;  %v694_v59 = vperm.slane %v689_v45, 3  ;;  %v693_v62 = vperm.slane %v689_v45, 2  ;;  %p1890_p3 = pnand %p1889_p13, %p1885_p10 }
  0x8b   : > { %777 = vmatpush.msrb.mxu3 %v676_v30  ;;  %717 = vmatpush.msrb.mxu0 %v673_v31  ;;  %v582_v49 = vperm.slane %v579_v46, 1  ;;  %v581_v52 = vperm.slane %v579_v46, 0  ;;  %v584_v60 = vperm.slane %v579_v46, 3  ;;  %v583_v63 = vperm.slane %v579_v46, 2  ;;  %v798_v10 = vld [vmem:[%s2313_s9] sm:$0xf] }
  0x8c   : > { %756 = vmatpush.msrb.mxu2 %v679_v32  ;;  %1485 = vmatmul.msk.f32.vlgmr.msrb.gmra.mxu3 %vm589_vm0, %v561_v28  ;;  %v800_v11 = vperm.slane %v798_v10, 0  ;;  %v802_v13 = vperm.slane %v798_v10, 2  ;;  %v789_v18 = vld [vmem:[#allocation12 + $0x38] sm:$0xff]  ;;  %v803_v31 = vperm.slane %v798_v10, 3  ;;  %v1190_v46 = vld [vmem:[#allocation14 + $0x1f0] sm:$0xff] }
  0x8d   : > { %1482 = vmatmul.msk.f32.vlgmr.msrb.gmra.mxu0 %vm589_vm0, %v561_v28  ;;  %843 = vmatpush.msra.mxu1 %v795_v5  ;;  %v785_v19 = vld [vmem:[#allocation12 + $0x18] sm:$0xff] }
  0x8e   : > { %757 = vmatpush.msrb.mxu2 %v675_v33  ;;  %823 = vmatpush.msra.mxu0 %v794_v36  ;;  %v1187_v5 = vld [vmem:[#allocation14 + $0x1d8] sm:$0xff] }
  0x8f   : > { %1484 = vmatmul.msk.f32.vlgmr.msrb.gmra.mxu2 %vm589_vm0, %v561_v28  ;;  %844 = vmatpush.msra.mxu1 %v791_v6  ;;  %v801_v28 = vperm.slane %v798_v10, 1  ;;  %v1150_v6 = vld [vmem:[#allocation14 + $0xb0] sm:$0xff]  ;;  %v1172_v10 = vld [vmem:[#allocation14 + $0x160] sm:$0xff] }
  0x90   : > { %863 = vmatpush.msra.mxu2 %v796_v34  ;;  %824 = vmatpush.msra.mxu0 %v790_v38 }
  0x91   : > { %883 = vmatpush.msra.mxu3 %v797_v7  ;;  %845 = vmatpush.msra.mxu1 %v787_v8  ;;  %v1173_v7 = vld [vmem:[#allocation14 + $0x168] sm:$0xff]  ;;  %v1186_v8 = vld [vmem:[#allocation14 + $0x1d0] sm:$0xff] }
  0x92   : > { %864 = vmatpush.msra.mxu2 %v792_v35  ;;  %825 = vmatpush.msra.mxu0 %v786_v40 }
  0x93   : > { %884 = vmatpush.msra.mxu3 %v793_v9  ;;  %846 = vmatpush.msra.mxu1 %v783_v16  ;;  %v1149_v9 = vld [vmem:[#allocation14 + $0xa8] sm:$0xff]  ;;  %v1142_v16 = vld [vmem:[#allocation14 + $0x70] sm:$0xff] }
  0x94   : > { %865 = vmatpush.msra.mxu2 %v788_v37  ;;  %826 = vmatpush.msra.mxu0 %v782_v42 }
  0x95   : > { %1486 = vmatmul.msk.f32.vlgmr.msra.gmra.mxu0 %vm589_vm0, %v2239_v41  ;;  %1487 = vmatmul.msk.f32.vlgmr.msra.gmra.mxu1 %vm589_vm0, %v2239_v41 }
  0x96   : > { %866 = vmatpush.msra.mxu2 %v784_v39  ;;  %885 = vmatpush.msra.mxu3 %v789_v18  ;;  %v1170_v18 = vld [vmem:[#allocation14 + $0x150] sm:$0xff] }
  0x97   : > { %1488 = vmatmul.msk.f32.vlgmr.msra.gmra.mxu2 %vm589_vm0, %v2239_v41 }
  0x98   : > { %886 = vmatpush.msra.mxu3 %v785_v19  ;;  %v1183_v19 = vld [vmem:[#allocation14 + $0x1b8] sm:$0xff] }
  0x99   : > { %1489 = vmatmul.msk.f32.vlgmr.msra.gmra.mxu3 %vm589_vm0, %v2239_v41  ;;  %v1191_v41 = vld [vmem:[#allocation14 + $0x1f8] sm:$0xff] }
  0xfe   : > { %v630_v43 = vpop.f32.mrf.mxu1 }
  0xff   : > { %v631_v56 = vadd.f32 %v630_v43, %v582_v49 }
 0x100   : > { %v610_v44 = vpop.f32.mrf.mxu0 }
 0x101   : > { %v611_v58 = vadd.f32 %v610_v44, %v581_v52  ;;  %v1159_v52 = vld [vmem:[#allocation14 + $0xf8] sm:$0xff] }
 0x106   : > { %v670_v48 = vpop.f32.mrf.mxu3 }
 0x107   : > { %v739_v50 = vpop.f32.mrf.mxu1  ;;  %v671_v2 = vadd.f32 %v670_v48, %v584_v60 }
 0x108   : > { %v740_v53 = vadd.f32 %v739_v50, %v692_v47  ;;  %v1189_v47 = vld [vmem:[#allocation14 + $0x1e8] sm:$0xff] }
 0x109   : > { %v650_v54 = vpop.f32.mrf.mxu2 }
 0x10a   : > { %v719_v55 = vpop.f32.mrf.mxu0  ;;  %965 = vmatpush.xpose.msrb.mxu2 %v740_v53  ;;  %v651_v4 = vadd.f32 %v650_v54, %v583_v63 }
 0x10b   : > { %v720_v57 = vadd.f32 %v719_v55, %v691_v51  ;;  %v1158_v55 = vld [vmem:[#allocation14 + $0xf0] sm:$0xff] }
 0x10d   : > { %906 = vmatpush.xpose.msrb.mxu0 %v720_v57  ;;  %966 = vmatmul.f32.vlgmr.msrb.gmra.mxu2 %v631_v56  ;;  %v1157_v56 = vld [vmem:[#allocation14 + $0xe8] sm:$0xff]  ;;  %v1156_v57 = vld [vmem:[#allocation14 + $0xe0] sm:$0xff] }
 0x10f   : > { %v779_v61 = vpop.f32.mrf.mxu3 }
 0x110   : > { %v780_v0 = vadd.f32 %v779_v61, %v694_v59  ;;  %907 = vmatmul.f32.vlgmr.msrb.gmra.mxu0 %v611_v58  ;;  %v1155_v59 = vld [vmem:[#allocation14 + $0xd8] sm:$0xff]  ;;  %v1154_v61 = vld [vmem:[#allocation14 + $0xd0] sm:$0xff] }
 0x112   : > { %v759_v1 = vpop.f32.mrf.mxu2  ;;  %1081 = vmatpush.xpose.msra.mxu2 %v780_v0  ;;  %v828_v12 = vpop.f32.mrf.mxu0  ;;  %v1152_v0 = vld [vmem:[#allocation14 + $0xc0] sm:$0xff] }
 0x113   : > { %v760_v3 = vadd.f32 %v759_v1, %v693_v62  ;;  %v829_v14 = vadd.f32 %v828_v12, %v800_v11  ;;  %v848_v29 = vpop.f32.mrf.mxu1  ;;  %v1153_v62 = vld [vmem:[#allocation14 + $0xc8] sm:$0xff]  ;;  %v1175_v1 = vld [vmem:[#allocation14 + $0x178] sm:$0xff] }
 0x114   : > { %v849_v30 = vadd.f32 %v848_v29, %v801_v28  ;;  %v1185_v11 = vld [vmem:[#allocation14 + $0x1c8] sm:$0xff]  ;;  %v1143_v12 = vld [vmem:[#allocation14 + $0x78] sm:$0xff]  ;;  %v1144_v29 = vld [vmem:[#allocation14 + $0x80] sm:$0xff] }
 0x115   : > { %1023 = vmatpush.xpose.msra.mxu0 %v760_v3  ;;  %1082 = vmatmul.f32.vlgmr.msra.gmra.mxu2 %v671_v2  ;;  %v1188_v2 = vld [vmem:[#allocation14 + $0x1e0] sm:$0xff]  ;;  %v1151_v3 = vld [vmem:[#allocation14 + $0xb8] sm:$0xff] }
 0x116   : > { %943 = vmatpush.msrb.mxu1 %v829_v14  ;;  %1001 = vmatpush.msrb.mxu3 %v849_v30  ;;  %v1171_v14 = vld [vmem:[#allocation14 + $0x158] sm:$0xff] }
 0x117   : > { %1236 = vmatpush.msrb.mxu2 %v1175_v1  ;;  %v1139_v28 = vld [vmem:[#allocation14 + $0x58] sm:$0xff] }
 0x118   : > { %1024 = vmatmul.f32.vlgmr.msra.gmra.mxu0 %v651_v4  ;;  %v1174_v4 = vld [vmem:[#allocation14 + $0x170] sm:$0xff]  ;;  %v1167_v30 = vld [vmem:[#allocation14 + $0x138] sm:$0xff] }
 0x119   : > { %1237 = vmatpush.msrb.mxu2 %v1174_v4  ;;  %1196 = vmatpush.msrb.mxu0 %v1143_v12 }
 0x11a   : > { %v868_v15 = vpop.f32.mrf.mxu2 }
 0x11b   : > { %v869_v17 = vadd.f32 %v868_v15, %v802_v13  ;;  %1238 = vmatpush.msrb.mxu2 %v1173_v7  ;;  %v1148_v13 = vld [vmem:[#allocation14 + $0xa0] sm:$0xff]  ;;  %1197 = vmatpush.msrb.mxu0 %v1142_v16 }
 0x11c   : > { %v888_v32 = vpop.f32.mrf.mxu3  ;;  %v1184_v15 = vld [vmem:[#allocation14 + $0x1c0] sm:$0xff] }
 0x11d   : > { %1059 = vmatpush.msra.mxu1 %v869_v17  ;;  %v889_v33 = vadd.f32 %v888_v32, %v803_v31  ;;  %1239 = vmatpush.msrb.mxu2 %v1172_v10  ;;  %v1147_v17 = vld [vmem:[#allocation14 + $0x98] sm:$0xff]  ;;  %v1180_v31 = vld [vmem:[#allocation14 + $0x1a0] sm:$0xff]  ;;  %v1138_v32 = vld [vmem:[#allocation14 + $0x50] sm:$0xff] }
 0x11f   : > { %1117 = vmatpush.msra.mxu3 %v889_v33  ;;  %1240 = vmatpush.msrb.mxu2 %v1171_v14  ;;  %v1166_v33 = vld [vmem:[#allocation14 + $0x130] sm:$0xff] }
 0x121   : > { %1241 = vmatpush.msrb.mxu2 %v1170_v18  ;;  %v1609_v18 = vld [vmem:[%s2314_s10] ss:$0 sm:$0xff] }
 0x18d   : > { %v908_v22 = vpop.f32.mrf.mxu0 }
 0x18e   : > { %v912_v25 = vsel %vm911_vm1, %v908_v22, -inf }
 0x190   : > { %v967_v20 = vpop.f32.mrf.mxu2 }
 0x191   : > { %v970_v21 = vsel %vm911_vm1, %v967_v20, -inf }
 0x192   : > { %971 = vmax.xlane.f32.xlu0 %v970_v21  ;;  %v1146_v21 = vld [vmem:[#allocation14 + $0x90] sm:$0xff] }
 0x195   : > { %v1025_v26 = vpop.f32.mrf.mxu0 }
 0x196   : > { %v1028_v27 = vsel %vm911_vm1, %v1025_v26, -inf }
 0x198   : > { %v1083_v23 = vpop.f32.mrf.mxu2 }
 0x199   : > { %v1086_v24 = vsel %vm911_vm1, %v1083_v23, -inf }
 0x19a   : > { %1087 = vmax.xlane.f32.xlu1 %v1086_v24  ;;  %913 = vmax.xlane.f32.xlu0 %v912_v25  ;;  %v1140_v24 = vld [vmem:[#allocation14 + $0x60] sm:$0xff]  ;;  %v1145_v25 = vld [vmem:[#allocation14 + $0x88] sm:$0xff] }
 0x1a2   : > { %1029 = vmax.xlane.f32.xlu1 %v1028_v27  ;;  %v1181_v27 = vld [vmem:[#allocation14 + $0x1a8] sm:$0xff] }
 0x205   : > { %v972_v34 = vpop.xlane.xlu0 %971 }
 0x206   : > { %v973_v35 = vsub.f32 %v967_v20, %v972_v34  ;;  %v1141_v20 = vld [vmem:[#allocation14 + $0x68] sm:$0xff]  ;;  %v1179_v34 = vld [vmem:[#allocation14 + $0x198] sm:$0xff] }
 0x207   : > { %1198 = vmatpush.msrb.mxu0 %v1141_v20 }
 0x208   : > { %v974_v36 = vmul.f32 1.442695, %v973_v35  ;;  %v1137_v35 = vld [vmem:[#allocation14 + $0x48] sm:$0xff] }
 0x209   : > { %1199 = vmatpush.msrb.mxu0 %v1140_v24 }
 0x20a   : > { %1610 = vpow2.f32 %v974_v36  ;;  %v1165_v36 = vld [vmem:[#allocation14 + $0x128] sm:$0xff] }
 0x20b   : > { %1200 = vmatpush.msrb.mxu0 %v1139_v28 }
 0x20d   : > { %v1088_v37 = vpop.xlane.xlu1 %1087  ;;  %v914_v38 = vpop.xlane.xlu0 %913  ;;  %1201 = vmatpush.msrb.mxu0 %v1138_v32 }
 0x20e   : > { %v1089_v39 = vsub.f32 %v1083_v23, %v1088_v37  ;;  %v915_v40 = vsub.f32 %v908_v22, %v914_v38  ;;  %v1169_v22 = vld [vmem:[#allocation14 + $0x148] sm:$0xff]  ;;  %v1182_v23 = vld [vmem:[#allocation14 + $0x1b0] sm:$0xff]  ;;  %v1136_v38 = vld [vmem:[#allocation14 + $0x40] sm:$0xff] }
 0x20f   : > { %1242 = vmatpush.msrb.mxu2 %v1169_v22  ;;  %v1178_v37 = vld [vmem:[#allocation14 + $0x190] sm:$0xff]  ;;  %1202 = vmatpush.msrb.mxu0 %v1137_v35 }
 0x210   : > { %v1611_v42 = vpop.eup %1610  ;;  %v1090_v43 = vmul.f32 1.442695, %v1089_v39  ;;  %v916_v44 = vmul.f32 1.442695, %v915_v40  ;;  %v1164_v39 = vld [vmem:[#allocation14 + $0x120] sm:$0xff]  ;;  %v1177_v40 = vld [vmem:[#allocation14 + $0x188] sm:$0xff] }
 0x211   : > { %1491 = vmatmul.msk.f32.vlgmr.msrb.gmra.mxu3 %vm911_vm1, %v1611_v42  ;;  %v976_v45 = vsel %vm911_vm1, %v1611_v42, 0.0  ;;  %1203 = vmatpush.msrb.mxu0 %v1136_v38  ;;  %v1163_v42 = vld [vmem:[#allocation14 + $0x118] sm:$0xff] }
 0x212   : > { %1612 = vpow2.f32 %v1090_v43  ;;  %977 = vadd.xlane.f32.xlu1 %v976_v45  ;;  %1256 = vmatpush.msrb.mxu3 %v1191_v41  ;;  %v1135_v41 = vld [vmem:[#allocation14 + $0x38] sm:$0xff]  ;;  %v1176_v43 = vld [vmem:[#allocation14 + $0x180] sm:$0xff]  ;;  %v1162_v45 = vld [vmem:[#allocation14 + $0x110] sm:$0xff] }
 0x213   : > { %1614 = vpow2.f32 %v916_v44  ;;  %1204 = vmatpush.msrb.mxu0 %v1135_v41  ;;  %v1134_v44 = vld [vmem:[#allocation14 + $0x30] sm:$0xff] }
 0x214   : > { %1257 = vmatpush.msrb.mxu3 %v1190_v46  ;;  %v1133_v46 = vld [vmem:[#allocation14 + $0x28] sm:$0xff] }
 0x215   : > { %v1030_v48 = vpop.xlane.xlu1 %1029  ;;  %1205 = vmatpush.msrb.mxu0 %v1134_v44 }
 0x216   : > { %v1031_v49 = vsub.f32 %v1025_v26, %v1030_v48  ;;  %1258 = vmatpush.msrb.mxu3 %v1189_v47  ;;  %v1168_v26 = vld [vmem:[#allocation14 + $0x140] sm:$0xff]  ;;  %v1161_v47 = vld [vmem:[#allocation14 + $0x108] sm:$0xff] }
 0x217   : > { %1243 = vmatpush.msrb.mxu2 %v1168_v26  ;;  %1206 = vmatpush.msrb.mxu0 %v1133_v46  ;;  %v1132_v48 = vld [vmem:[#allocation14 + $0x20] sm:$0xff] }
 0x218   : > { %v1613_v50 = vpop.eup %1612  ;;  %v1032_v51 = vmul.f32 1.442695, %v1031_v49  ;;  %1259 = vmatpush.msrb.mxu3 %v1188_v2  ;;  %v1160_v49 = vld [vmem:[#allocation14 + $0x100] sm:$0xff] }
 0x219   : > { %v1615_v53 = vpop.eup %1614  ;;  %1493 = vmatmul.msk.f32.vlgmr.msra.gmra.mxu3 %vm911_vm1, %v1613_v50  ;;  %v1092_v54 = vsel %vm911_vm1, %v1613_v50, 0.0  ;;  %1244 = vmatpush.msrb.mxu2 %v1167_v30 }
 0x21a   : > { %1616 = vpow2.f32 %v1032_v51  ;;  %1490 = vmatmul.msk.f32.vlgmr.msrb.gmra.mxu1 %vm911_vm1, %v1615_v53  ;;  %1093 = vadd.xlane.f32.xlu0 %v1092_v54  ;;  %v918_v63 = vsel %vm911_vm1, %v1615_v53, 0.0  ;;  %v1131_v51 = vld [vmem:[#allocation14 + $0x18] sm:$0xff]  ;;  %v1129_v53 = vld [vmem:[#allocation14 + $0x8] sm:$0xff]  ;;  %v1128_v54 = vld [vmem:[#allocation14] sm:$0xff] }
 0x21b   : > { %1216 = vmatpush.msrb.mxu1 %v1159_v52  ;;  %1260 = vmatpush.msrb.mxu3 %v1187_v5  ;;  %v1130_v52 = vld [vmem:[#allocation14 + $0x10] sm:$0xff] }
 0x21c   : > { %1245 = vmatpush.msrb.mxu2 %v1166_v33  ;;  %1207 = vmatpush.msrb.mxu0 %v1132_v48 }
 0x21d   : > { %1217 = vmatpush.msrb.mxu1 %v1158_v55  ;;  %1261 = vmatpush.msrb.mxu3 %v1186_v8 }
 0x21e   : > { %1246 = vmatpush.msrb.mxu2 %v1165_v36  ;;  %1208 = vmatpush.msrb.mxu0 %v1131_v51 }
 0x21f   : > { %1218 = vmatpush.msrb.mxu1 %v1157_v56  ;;  %1262 = vmatpush.msrb.mxu3 %v1185_v11 }
 0x220   : > { %v1617_v58 = vpop.eup %1616  ;;  %1247 = vmatpush.msrb.mxu2 %v1164_v39  ;;  %1209 = vmatpush.msrb.mxu0 %v1130_v52 }
 0x221   : > { %v1034_v60 = vsel %vm911_vm1, %v1617_v58, 0.0  ;;  %1219 = vmatpush.msrb.mxu1 %v1156_v57  ;;  %1263 = vmatpush.msrb.mxu3 %v1184_v15 }
 0x222   : > { %1492 = vmatmul.msk.f32.vlgmr.msra.gmra.mxu1 %vm911_vm1, %v1617_v58  ;;  %1035 = vadd.xlane.f32.xlu2 %v1034_v60 }
 0x223   : > { %1220 = vmatpush.msrb.mxu1 %v1155_v59  ;;  %1264 = vmatpush.msrb.mxu3 %v1183_v19 }
 0x224   : > { %1248 = vmatpush.msrb.mxu2 %v1163_v42  ;;  %1210 = vmatpush.msrb.mxu0 %v1129_v53 }
 0x225   : > { %1221 = vmatpush.msrb.mxu1 %v1154_v61  ;;  %1265 = vmatpush.msrb.mxu3 %v1182_v23 }
 0x226   : > { %1249 = vmatpush.msrb.mxu2 %v1162_v45  ;;  %1211 = vmatpush.msrb.mxu0 %v1128_v54 }
 0x227   : > { %1222 = vmatpush.msrb.mxu1 %v1153_v62  ;;  %1266 = vmatpush.msrb.mxu3 %v1181_v27 }
 0x228   : > { %1250 = vmatpush.msrb.mxu2 %v1161_v47 }
 0x229   : > { %1223 = vmatpush.msrb.mxu1 %v1152_v0  ;;  %1267 = vmatpush.msrb.mxu3 %v1180_v31 }
 0x22a   : > { %919 = vadd.xlane.f32.xlu2 %v918_v63  ;;  %1251 = vmatpush.msrb.mxu2 %v1160_v49 }
 0x22b   : > { %1224 = vmatpush.msrb.mxu1 %v1151_v3  ;;  %1268 = vmatpush.msrb.mxu3 %v1179_v34 }
 0x22d   : > { %1225 = vmatpush.msrb.mxu1 %v1150_v6  ;;  %1269 = vmatpush.msrb.mxu3 %v1178_v37 }
 0x22f   : > { %1226 = vmatpush.msrb.mxu1 %v1149_v9  ;;  %1270 = vmatpush.msrb.mxu3 %v1177_v40 }
 0x231   : > { %1227 = vmatpush.msrb.mxu1 %v1148_v13  ;;  %1271 = vmatpush.msrb.mxu3 %v1176_v43 }
 0x233   : > { %1228 = vmatpush.msrb.mxu1 %v1147_v17 }
 0x235   : > { %1229 = vmatpush.msrb.mxu1 %v1146_v21 }
 0x237   : > { %1230 = vmatpush.msrb.mxu1 %v1145_v25 }
 0x239   : > { %1231 = vmatpush.msrb.mxu1 %v1144_v29 }
 0x285   : > { %v978_v50 = vpop.xlane.xlu1 %977 }
 0x286   : > { %1618 = vrcp.f32 %v978_v50 }
 0x28c   : > { %v1619_v55 = vpop.eup %1618 }
 0x28d   : > { %v980_v56 = vmul.f32 %v1619_v55, %v978_v50  ;;  %v1094_v57 = vpop.xlane.xlu0 %1093 }
 0x28e   : > { %1620 = vrcp.f32 %v1094_v57 }
 0x28f   : > { %v981_v58 = vsub.f32 2.0, %v980_v56 }
 0x291   : > { %v982_v59 = vmul.f32 %v1619_v55, %v981_v58 }
 0x294   : > { %v1621_v60 = vpop.eup %1620  ;;  %v1003_v61 = vpop.f32.mrf.mxu3 }
 0x295   : > { %v1096_v62 = vmul.f32 %v1621_v60, %v1094_v57  ;;  %v1006_v63 = vmul.f32 %v1003_v61, %v982_v59  ;;  %v1036_v0 = vpop.xlane.xlu2 %1035 }
 0x296   : > { %1622 = vrcp.f32 %v1036_v0 }
 0x297   : > { %v1097_v1 = vsub.f32 2.0, %v1096_v62  ;;  %1232 = vmatmul.f32.vlgmr.msrb.gmra.mxu1 %v1006_v63  ;;  %v945_v2 = vpop.f32.mrf.mxu1 }
 0x299   : > { %v1098_v3 = vmul.f32 %v1621_v60, %v1097_v1 }
 0x29c   : > { %v1623_v4 = vpop.eup %1622  ;;  %v1119_v5 = vpop.f32.mrf.mxu3 }
 0x29d   : > { %v1038_v6 = vmul.f32 %v1623_v4, %v1036_v0  ;;  %v1122_v7 = vmul.f32 %v1119_v5, %v1098_v3  ;;  %v920_v8 = vpop.xlane.xlu2 %919 }
 0x29e   : > { %1624 = vrcp.f32 %v920_v8 }
 0x29f   : > { %v1039_v9 = vsub.f32 2.0, %v1038_v6  ;;  %1272 = vmatmul.f32.vlgmr.msrb.gmra.mxu3 %v1122_v7  ;;  %v1061_v11 = vpop.f32.mrf.mxu1 }
 0x2a1   : > { %v1040_v10 = vmul.f32 %v1623_v4, %v1039_v9 }
 0x2a3   : > { %v1064_v12 = vmul.f32 %v1061_v11, %v1040_v10 }
 0x2a4   : > { %v1625_v13 = vpop.eup %1624 }
 0x2a5   : > { %v922_v14 = vmul.f32 %v1625_v13, %v920_v8  ;;  %1252 = vmatmul.f32.vlgmr.msrb.gmra.mxu2 %v1064_v12 }
 0x2a7   : > { %v923_v15 = vsub.f32 2.0, %v922_v14 }
 0x2a9   : > { %v924_v16 = vmul.f32 %v1625_v13, %v923_v15 }
 0x2ab   : > { %v948_v17 = vmul.f32 %v945_v2, %v924_v16 }
 0x2ad   : > { %1212 = vmatmul.f32.vlgmr.msrb.gmra.mxu0 %v948_v17 }
 0x314   : > { %v1233_v21 = vpop.f32.mrf.mxu1 }
 0x322   : > { %v1273_v25 = vpop.f32.mrf.mxu3 }
 0x328   : > { %v1253_v23 = vpop.f32.mrf.mxu2 }
 0x32a   : > { %v1213_v19 = vpop.f32.mrf.mxu0 }
 0x32b   : > { %v1214_v20 = vadd.f32 %v1609_v18, %v1213_v19 }
 0x32d   : > { %v1234_v22 = vadd.f32 %v1233_v21, %v1214_v20 }
 0x32f   : > { %v1254_v24 = vadd.f32 %v1253_v23, %v1234_v22 }
 0x331   : > { %v1274_v26 = vadd.f32 %v1273_v25, %v1254_v24 }
 0x333   : > { %1276 = vst [vmem:[%s559_s23] sm:$0xff] %v1274_v26 }
 0x334   : > { %1893 = shalt.err (!%p1890_p3)
}
 0x335   : > { %1524 = dma.vmem_to_hbm [thread:$0]  (%p2098_p4), %s1291_s22, 128, %s1293_s21, %s1278_s24  }
 0x336 PF: > { %s2362_s14 = sld [smem:[#allocation24_spill]] }
 0x337   : > { %s2364_s11 = sld [smem:[#allocation25_spill]] }
 0x33c   : > { %s1304_s15 = sand.u32 1, %s2362_s14  }
 0x33d   : > { %p2365_p7 = scmp.ge.s32.totalorder %s2364_s11, 2  ;;  %s1305_s16 = scalar_lea.sflag [#allocation5], %s1304_s15 }
 0x33f   : > { %p1553_p9 = pnand %p2365_p7, %p2102_p5 }
 0x341   : > { %p1554_p0 = pneg %p1553_p9 }
 0x343   : > { %1931 = dma.done.wait (%p1554_p0), %s1305_s16, 128  }
 0x344   : > { %1933 = vsyncadd (%p1554_p0), %s1305_s16, 4294967168  ;;  %s2366_s20 = sld [smem:[#allocation26_spill]]  ;;  %s2368_s17 = smov %s1940_s18 }
 0x345   : > { %s2367_s5 = sld [smem:[#allocation27_spill]]  ;;  %s2369_s18 = smov %s1944_s19 }
 0x34a   : > { %p30_p2 = scmp.ge.s32.totalorder %s2366_s20, 4  }
 0x34b   : > { %s2370_s19 = smov %s2367_s5 }
 0x34c   :  { %32 = sbr.rel (!%p30_p2) target bundleno = 17 (0x11), region = 153 }
 0x351   :  { %1311 = vsyncpa [#allocation4], 1 }
 0x352   :  { %1313 = vsyncpa [#allocation4 + $0x1], 1 }
 0x353   :  { %1314 = vsyncpa [#allocation7], 1 }
 0x354   :  { %1316 = vsyncpa [#allocation7 + $0x1], 1 }
 0x355   :  { %1317 = vsyncpa [#allocation10], 1 }
 0x356   :  { %1318 = vsyncpa [#allocation13], 1 }
 0x357   :  { %1319 = vsyncpa [#allocation16], 1 }
 0x358   :  { %1320 = vsyncpa [#allocation5], 1 }
 0x359   :  { %1322 = vsyncpa [#allocation5 + $0x1], 1 }

</bundles_post_ra>
